<compile_context>
chip_gen: v7x
topology: tpu7x:2x2x1
jax: 0.10.0
libtpu: 0.0.40
codegen_flags: <defaults>
</compile_context>

<pallas_src>
import functools

import jax
import jax.numpy as jnp
from jax.experimental import pallas as pl
from jax.experimental.pallas import tpu as pltpu


def _gce_kernel(logits_ref, targets_ref, loss_ref, *, q, apply_weight):
    """Per-tile GCE loss. All math in f32 on the VPU/EUP.

    logits_ref : (TN, C)  float (any float dtype in HBM; upcast here)
    targets_ref: (TN, 1)  int32
    loss_ref   : (TN, 1)  float32
    """
    x = logits_ref[...].astype(jnp.float32)                 # (TN, C)
    tgt = targets_ref[...]                                   # (TN, 1) int32

    # Numerically-stable log-softmax pieces.
    m = jnp.max(x, axis=-1, keepdims=True)                   # (TN, 1)
    lse = m + jnp.log(jnp.sum(jnp.exp(x - m), axis=-1, keepdims=True))  # (TN, 1)

    # Gather logit at the target class via a one-hot mask (TPU needs >=2D iota).
    # TODO(synk): assumes 0 <= target < C; torch-style ignore_index / OOB targets
    # silently yield x_t = 0 here instead of raising.
    cls = jax.lax.broadcasted_iota(jnp.int32, x.shape, 1)     # (TN, C)
    onehot = cls == tgt                                        # (TN, C)
    x_t = jnp.sum(jnp.where(onehot, x, 0.0), axis=-1, keepdims=True)  # (TN, 1)

    ce = lse - x_t                                             # per-sample cross entropy
    if apply_weight:
        # Yg**q * q == q * exp(q * log p_t) == q * exp(q * (x_t - lse)); single exp,
        # no pow (which would lower to log+exp) and no intermediate p_t that can
        # underflow to 0 before the pow.
        # (torch detaches this weight; forward-only kernel so semantics match.)
        weight = q * jnp.exp(q * (x_t - lse))
        loss_ref[...] = ce * weight
    else:
        loss_ref[...] = ce


def generalized_ce_loss(logits, targets, *, q=0.7, reduction=None, block_rows=None):
    """JAX/Pallas forward pass of GeneralizedCELoss.

    logits : (N, C) float array (f32 or bf16 -- bf16 is NOT upcast before the kernel)
    targets: (N,)   integer class indices, 0 <= t < C
    """
    N, C = logits.shape
    targets2d = targets.astype(jnp.int32).reshape(N, 1)

    # ---- pick a row-tile size: ~4 MiB logits tile (double-buffered by the pipeline),
    # multiple of 8 sublanes, never larger than the (padded) batch.
    itemsize = jnp.dtype(logits.dtype).itemsize
    if block_rows is None:
        tn = (4 * 1024 * 1024) // max(C * itemsize, 1)
        tn = min(1024, tn)
    else:
        tn = int(block_rows)
    tn = min(tn, ((N + 7) // 8) * 8)
    tn = max(8, (tn // 8) * 8)

    # ---- pad N up to a multiple of the tile; padded rows are sliced off below, so
    # they never reach the mean.
    n_pad = pl.cdiv(N, tn) * tn
    if n_pad != N:
        logits = jnp.pad(logits, ((0, n_pad - N), (0, 0)))
        targets2d = jnp.pad(targets2d, ((0, n_pad - N), (0, 0)))

    apply_weight = q != 0
    kernel = functools.partial(_gce_kernel, q=float(q), apply_weight=apply_weight)

    grid = (n_pad // tn,)
    loss = pl.pallas_call(
        kernel,
        out_shape=jax.ShapeDtypeStruct((n_pad, 1), jnp.float32),
        grid_spec=pltpu.PrefetchScalarGridSpec(
            num_scalar_prefetch=0,
            grid=grid,
            in_specs=[
                pl.BlockSpec((tn, C), lambda i: (i, 0)),   # class axis stays on lanes
                pl.BlockSpec((tn, 1), lambda i: (i, 0)),
            ],
            out_specs=pl.BlockSpec((tn, 1), lambda i: (i, 0)),
        ),
        compiler_params=pltpu.CompilerParams(
            # Row tiles are independent -> shardable across v7x's 2 TensorCores;
            # harmless on single-TC v5e/v6e.
            dimension_semantics=("parallel",),
            # Explicit headroom: fits v7x's 64 MiB physical VMEM, above v5e's 16 MiB
            # scoped default.
            vmem_limit_bytes=48 * 1024 * 1024,
        ),
    )(logits, targets2d)
    # TODO(synk): very large C (LLM-vocab) would need a second 'arbitrary' grid axis
    # over C with an online max/sum accumulator; full-row blocks are fine at these sizes.
    # TODO(synk): torch's host-side NaN checks (raise NameError('GCE_p'/'GCE_Yg')) have
    # no clean in-kernel equivalent and are omitted.

    loss = loss[:N, 0]  # drop padded rows; matches torch's (N,) per-sample loss

    if q == 0:
        # torch path: F.cross_entropy(..., reduction='none'), no mean.
        return loss
    if reduction == 'none':
        return loss
    return jnp.mean(loss)


def _reference(logits, targets, q=0.7, reduction=None):
    """Pure-JAX reference mirroring the torch module."""
    logits = logits.astype(jnp.float32)
    logp = jax.nn.log_softmax(logits, axis=1)
    ce = -jnp.take_along_axis(logp, targets[:, None], axis=1)[:, 0]
    if q == 0:
        return ce
    p = jax.nn.softmax(logits, axis=1)
    yg = jnp.take_along_axis(p, targets[:, None], axis=1)[:, 0]
    loss = ce * (yg ** q) * q
    return loss if reduction == 'none' else jnp.mean(loss)


if __name__ == "__main__":
    key = jax.random.PRNGKey(0)
    k_logits, k_tgt = jax.random.split(key)

    N, C = 8, 32  # batch of 8 samples, 32 classes
    logits = jax.random.normal(k_logits, (N, C), dtype=jnp.float32)
    targets = jax.random.randint(k_tgt, (N,), 0, C, dtype=jnp.int32)

    # default module config: reduction=None, q=0.7 -> mean of weighted loss
    out = jax.block_until_ready(generalized_ce_loss(logits, targets, q=0.7, reduction=None))
    ref = _reference(logits, targets, q=0.7, reduction=None)
    assert jnp.allclose(out, ref, atol=1e-5, rtol=1e-5), (out, ref)

    # reduction='none' (per-sample losses)
    out_none = jax.block_until_ready(
        generalized_ce_loss(logits, targets, q=0.7, reduction='none'))
    ref_none = _reference(logits, targets, q=0.7, reduction='none')
    assert jnp.allclose(out_none, ref_none, atol=1e-5, rtol=1e-5)

    # q == 0 path: plain per-sample cross entropy (no mean)
    out_q0 = jax.block_until_ready(generalized_ce_loss(logits, targets, q=0.0))
    ref_q0 = _reference(logits, targets, q=0.0)
    assert jnp.allclose(out_q0, ref_q0, atol=1e-5, rtol=1e-5)

    # bf16 logits stay bf16 in HBM (kernel upcasts after the DMA)
    logits_bf16 = logits.astype(jnp.bfloat16)
    out_bf16 = jax.block_until_ready(generalized_ce_loss(logits_bf16, targets, q=0.7))
    ref_bf16 = _reference(logits_bf16.astype(jnp.float32), targets, q=0.7)
    assert jnp.allclose(out_bf16, ref_bf16, atol=1e-3, rtol=1e-3)

    # ragged batch + multi-tile grid: N not a multiple of the tile, forced block_rows=8
    N2 = 13
    logits2 = jax.random.normal(k_logits, (N2, C), dtype=jnp.float32)
    targets2 = jax.random.randint(k_tgt, (N2,), 0, C, dtype=jnp.int32)
    out2 = jax.block_until_ready(
        generalized_ce_loss(logits2, targets2, q=0.7, block_rows=8))
    ref2 = _reference(logits2, targets2, q=0.7)
    assert jnp.allclose(out2, ref2, atol=1e-5, rtol=1e-5), (out2, ref2)
    out2n = jax.block_until_ready(
        generalized_ce_loss(logits2, targets2, q=0.7, reduction='none', block_rows=8))
    ref2n = _reference(logits2, targets2, q=0.7, reduction='none')
    assert jnp.allclose(out2n, ref2n, atol=1e-5, rtol=1e-5)

    print("KERNEL_OK")
</pallas_src>

<mosaic_0001>
module attributes {stable_mosaic.version = 11 : i64} {
  func.func @_gce_kernel(%arg0: i32, %arg1: memref<8x32xf32, #tpu.memory_space<vmem>>, %arg2: memref<8x1xi32, #tpu.memory_space<vmem>>, %arg3: memref<8x1xf32, #tpu.memory_space<vmem>>) attributes {dimension_semantics = [#tpu.dimension_semantics<parallel>], iteration_bounds = array<i64: 1>, scalar_prefetch = 0 : i64, scratch_operands = 0 : i64, tpu.core_type = #tpu.core_type<tc>, window_params = [{transform_indices = @transform_0, window_bounds = array<i64: 8, 32>}, {transform_indices = @transform_1, window_bounds = array<i64: 8, 1>}, {transform_indices = @transform_2, window_bounds = array<i64: 8, 1>}]} {
    %c0 = arith.constant 0 : index
    %c0_0 = arith.constant 0 : index
    %0 = vector.load %arg1[%c0, %c0_0] : memref<8x32xf32, #tpu.memory_space<vmem>>, vector<8x32xf32>
    %c0_1 = arith.constant 0 : index
    %c0_2 = arith.constant 0 : index
    %1 = vector.load %arg2[%c0_1, %c0_2] : memref<8x1xi32, #tpu.memory_space<vmem>>, vector<8x1xi32>
    %cst = arith.constant dense<0xFF800000> : vector<8xf32>
    %2 = vector.multi_reduction <maximumf>, %0, %cst [1] : vector<8x32xf32> to vector<8xf32>
    %3 = vector.shape_cast %2 : vector<8xf32> to vector<8x1xf32>
    %4 = vector.broadcast %3 : vector<8x1xf32> to vector<8x32xf32>
    %5 = arith.subf %0, %4 : vector<8x32xf32>
    %6 = math.exp %5 : vector<8x32xf32>
    %cst_3 = arith.constant dense<0.000000e+00> : vector<8xf32>
    %7 = vector.multi_reduction <add>, %6, %cst_3 [1] : vector<8x32xf32> to vector<8xf32>
    %8 = vector.shape_cast %7 : vector<8xf32> to vector<8x1xf32>
    %9 = math.log %8 : vector<8x1xf32>
    %10 = arith.addf %3, %9 : vector<8x1xf32>
    %11 = tpu.iota {dimensions = array<i32: 1>} : vector<8x32xi32>
    %12 = vector.broadcast %1 : vector<8x1xi32> to vector<8x32xi32>
    %13 = arith.cmpi eq, %11, %12 : vector<8x32xi32>
    %cst_4 = arith.constant 0.000000e+00 : f32
    %14 = vector.broadcast %cst_4 : f32 to vector<8x32xf32>
    %15 = arith.select %13, %0, %14 : vector<8x32xi1>, vector<8x32xf32>
    %cst_5 = arith.constant dense<0.000000e+00> : vector<8xf32>
    %16 = vector.multi_reduction <add>, %15, %cst_5 [1] : vector<8x32xf32> to vector<8xf32>
    %17 = vector.shape_cast %16 : vector<8xf32> to vector<8x1xf32>
    %18 = arith.subf %10, %17 : vector<8x1xf32>
    %19 = arith.subf %17, %10 : vector<8x1xf32>
    %cst_6 = arith.constant 0.699999988 : f32
    %20 = vector.broadcast %cst_6 : f32 to vector<8x1xf32>
    %21 = arith.mulf %20, %19 : vector<8x1xf32>
    %22 = math.exp %21 : vector<8x1xf32>
    %cst_7 = arith.constant 0.699999988 : f32
    %23 = vector.broadcast %cst_7 : f32 to vector<8x1xf32>
    %24 = arith.mulf %23, %22 : vector<8x1xf32>
    %25 = arith.mulf %18, %24 : vector<8x1xf32>
    %c0_8 = arith.constant 0 : index
    %c0_9 = arith.constant 0 : index
    %26 = vector.load %arg3[%c0_8, %c0_9] : memref<8x1xf32, #tpu.memory_space<vmem>>, vector<8x1xf32>
    tpu.vector_store %arg3[%c0_8, %c0_9], %25 {strides = array<i32>} : memref<8x1xf32, #tpu.memory_space<vmem>>, vector<8x1xf32>,
    return
  }
  func.func @transform_0(%arg0: i32) -> (i32, i32) {
    %c0_i32 = arith.constant 0 : i32
    %c0_i32_0 = arith.constant 0 : i32
    return %arg0, %c0_i32 : i32, i32
  }
  func.func @transform_1(%arg0: i32) -> (i32, i32) {
    %c0_i32 = arith.constant 0 : i32
    %c0_i32_0 = arith.constant 0 : i32
    return %arg0, %c0_i32 : i32, i32
  }
  func.func @transform_2(%arg0: i32) -> (i32, i32) {
    %c0_i32 = arith.constant 0 : i32
    %c0_i32_0 = arith.constant 0 : i32
    return %arg0, %c0_i32 : i32, i32
  }
}

</mosaic_0001>

<bundles_post_ra>
// kernel: tpu_custom_call.1
= control target key start
LH: loop header
LB: loop body
LE: loop exit
PB: predicated region body
PF: predicated region fallthrough
CT: control target
= control target key end

     0   :  { %vm13_vm0 = vcmask 261120   ;;  %v57_v1 = vmov 0   ;;  %v26_v7 = vlaneseq  ;;  %vm43_vm2 = vcmask 7168   ;;  %s85_s0 = inlined_call_operand.vmem [shape: f32[8,32], index: 0, kind: input, shape index: {}]   ;;  %s86_s1 = inlined_call_operand.vmem [shape: s32[8,1], index: 1, kind: input, shape index: {}]   ;;  %s87_s2 = inlined_call_operand.vmem [shape: f32[8,1], index: 2, kind: output, shape index: {}]  }
   0x1   :  { %v11_v0 = vld [vmem:[%s85_s0] sm:$0xff]  ;;  %50 = vset.pattern.permute.xlu0 %v57_v1 }
   0x2   :  { %v14_v2 = vsel %vm13_vm0, %v11_v0, -inf  ;;  %v12_v3 = vld [vmem:[%s86_s1] sm:$0xff]  ;;  %v27_v8 = vand.u32 127, %v26_v7 }
   0x3   :  { %15 = vmax.xlane.f32.xlu0 %v14_v2 }
  0x19   :  { %29 = vperm.xlu0 %50, %v12_v3  }
  0x90   :  { %v16_v4 = vpop.xlane.xlu0 %15 }
  0x91   :  { %v17_v5 = vsub.f32 %v11_v0, %v16_v4 }
  0x93   :  { %v18_v6 = vmul.f32 1.442695, %v17_v5 }
  0x95   :  { %51 = vpow2.f32 %v18_v6 }
  0x98   :  { %v30_v9 = vpop.permute.xlu0 %29 }
  0x99   :  { %vm31_vm1 = vcmp.eq.s32.totalorder %v27_v8, %v30_v9 }
  0x9a   :  { %v32_v11 = vsel %vm31_vm1, %v11_v0, 0.0 }
  0x9b   :  { %v33_v13 = vsel %vm13_vm0, %v32_v11, 0.0 }
  0x9f   :  { %v52_v10 = vpop.eup %51 }
  0xa0   :  { %v20_v12 = vsel %vm13_vm0, %v52_v10, 0.0 }
  0xa1   :  { %21 = vadd.xlane.f32.xlu1 %v20_v12 }
  0xa5   :  { %34 = vadd.xlane.f32.xlu1 %v33_v13 }
 0x12e   :  { %v22_v14 = vpop.xlane.xlu1 %21 }
 0x12f   :  { %53 = vlog2.f32 %v22_v14 }
 0x132   :  { %v35_v17 = vpop.xlane.xlu1 %34 }
 0x139   :  { %v54_v15 = vpop.eup %53 }
 0x13a   :  { %v24_v16 = vmul.f32 0.6931472, %v54_v15 }
 0x13c   :  { %v25_v18 = vadd.f32 %v24_v16, %v16_v4 }
 0x13e   :  { %v37_v19 = vsub.f32 %v35_v17, %v25_v18  ;;  %v36_v23 = vsub.f32 %v25_v18, %v35_v17 }
 0x140   :  { %v38_v20 = vmul.f32 0.7, %v37_v19 }
 0x142   :  { %v39_v21 = vmul.f32 1.442695, %v38_v20 }
 0x144   :  { %55 = vpow2.f32 %v39_v21 }
 0x14e   :  { %v56_v22 = vpop.eup %55 }
 0x14f   :  { %v41_v24 = vmul.f32 0.7, %v56_v22 }
 0x151   :  { %v42_v25 = vmul.f32 %v41_v24, %v36_v23 }
 0x153   :  { %44 = vst.msk [vmem:[%s87_s2] sm:$0xff] %vm43_vm2, %v42_v25 }

</bundles_post_ra>
